<compile_context>
chip_gen: v5e
topology: v5e:2x2
jax: 0.10.0
libtpu: 0.0.40
codegen_flags: <defaults>
</compile_context>

<pallas_src>
import functools

import jax
import jax.numpy as jnp
from jax import lax
from jax.experimental import pallas as pl
from jax.experimental.pallas import tpu as pltpu


# --------------------------------------------------------------------------
# Helpers
# --------------------------------------------------------------------------
def _round_up(x, m):
    return ((x + m - 1) // m) * m


def _vmem_budget_bytes():
    """~0.6 of physical VMEM (queried), conservative 64 MiB fallback (v7x)."""
    cap = None
    try:
        info = pltpu.get_tpu_info()
        cap = getattr(info, "vmem_capacity_bytes", None)
    except Exception:
        cap = None
    if not cap:
        cap = 64 * 1024 * 1024
    return int(cap) * 6 // 10


def _pick_tile_lanes(hw, c, itemsize, target_bytes):
    """128-multiple lane-tile whose (C, tile) slab is ~target_bytes."""
    max_lanes = max(128, ((target_bytes // max(1, c * itemsize)) // 128) * 128)
    hw128 = _round_up(hw, 128)
    if hw128 <= max_lanes:
        return hw128
    if hw % 128 == 0:
        # Prefer a 128-multiple divisor of hw near the target (no padding).
        t = max_lanes
        while t >= max(128, max_lanes // 2):
            if hw % t == 0:
                return t
            t -= 128
    return max_lanes  # wrapper zero-pads hw up to a multiple of this


# --------------------------------------------------------------------------
# Fused single-sweep kernel: stats + normalize in one HBM pass per sample
# --------------------------------------------------------------------------
def _fused_rln_kernel(x_ref, w_ref, b_ref, out_ref, mean_ref, std_ref, *,
                      chunk, n_chunks, n_elems, eps):
    C = x_ref.shape[1]
    n_strips = chunk // 128

    # --- stats: lane-dense (C,128) partial sums, VALU-only inner loop ---
    def stats_body(i, carry):
        s, q = carry
        base = pl.multiple_of(i * chunk, 128)
        xc = x_ref[0, :, pl.ds(base, chunk)].astype(jnp.float32)  # (C, chunk)
        for j in range(n_strips):                                  # static, lane-aligned
            strip = xc[:, j * 128:(j + 1) * 128]
            s = s + strip
            q = q + strip * strip
        return s, q

    zeros = jnp.zeros((C, 128), jnp.float32)
    s, q = lax.fori_loop(0, n_chunks, stats_body, (zeros, zeros))

    total_sum = jnp.sum(s)     # single cross-lane reduce per sample
    total_ssq = jnp.sum(q)
    mean = total_sum / n_elems
    var = jnp.maximum(total_ssq / n_elems - mean * mean, 0.0)
    std = jnp.sqrt(var + eps)
    inv_std = 1.0 / std

    scale = w_ref[0] * inv_std            # (C, 1) = w / std
    shift = b_ref[0] - mean * scale       # (C, 1) = b - mean*w/std

    # --- apply: one FMA per element, re-read from the resident VMEM block ---
    def apply_body(i, _):
        base = pl.multiple_of(i * chunk, 128)
        xc = x_ref[0, :, pl.ds(base, chunk)].astype(jnp.float32)
        out_ref[0, :, pl.ds(base, chunk)] = (xc * scale + shift).astype(out_ref.dtype)
        return 0

    lax.fori_loop(0, n_chunks, apply_body, 0)

    mean_ref[...] = jnp.reshape(mean, (1, 1, 1))
    std_ref[...] = jnp.reshape(std, (1, 1, 1))


# --------------------------------------------------------------------------
# Two-pass fallback kernels (samples that do not fit the VMEM budget)
# --------------------------------------------------------------------------
def _stats_kernel(x_ref, sum_ref, ssq_ref):
    """Lane-dense (1, C, 128) resident vector accumulators for sum / sum-sq."""
    t = pl.program_id(1)

    @pl.when(t == 0)
    def _():
        sum_ref[...] = jnp.zeros_like(sum_ref)
        ssq_ref[...] = jnp.zeros_like(ssq_ref)

    x = x_ref[0].astype(jnp.float32)          # (C, tile)
    tile = x.shape[-1]
    s = sum_ref[0]                             # (C, 128)
    q = ssq_ref[0]
    for j in range(tile // 128):               # static, lane-aligned strips
        strip = x[:, j * 128:(j + 1) * 128]
        s = s + strip
        q = q + strip * strip
    sum_ref[0] = s
    ssq_ref[0] = q


def _apply_kernel(x_ref, scale_ref, shift_ref, out_ref):
    """out = x * scale + shift (per-sample/channel affine)."""
    x = x_ref[...].astype(jnp.float32)         # (1, C, tile)
    out_ref[...] = (x * scale_ref[...] + shift_ref[...]).astype(out_ref.dtype)


# --------------------------------------------------------------------------
# Wrapper
# --------------------------------------------------------------------------
def rln_forward(x, weight, bias, m1_w, m1_b, m2_w, m2_b, eps=1e-5,
                force_two_pass=False):
    """x: [B, C, H, W]. Returns (out [B,C,H,W], rescale [B,C,1,1], rebias [B,C,1,1])."""
    B, C, H, W = x.shape
    HW = H * W
    n_elems = float(C * HW)
    itemsize = jnp.dtype(x.dtype).itemsize     # real itemsize (bf16 -> 2)
    budget = _vmem_budget_bytes()

    w3 = weight.reshape(1, C, 1).astype(jnp.float32)
    b3 = bias.reshape(1, C, 1).astype(jnp.float32)

    # ---- fused feasibility: 2x double-buffered in + out, f32 chunk temps ----
    chunk = min(2048, _round_up(HW, 128))
    HWp_f = _round_up(HW, chunk)
    fused_bytes = (4 * C * HWp_f * itemsize
                   + 4 * C * chunk * 4
                   + 2 * 1024 * 1024)
    use_fused = (not force_two_pass) and (fused_bytes <= budget)

    if use_fused:
        # ------------- fused path: 1 read + 1 write of x -------------
        x_flat = x.reshape(B, C, HW)
        if HWp_f != HW:
            x_flat = jnp.pad(x_flat, ((0, 0), (0, 0), (0, HWp_f - HW)))
        kernel = functools.partial(
            _fused_rln_kernel, chunk=chunk, n_chunks=HWp_f // chunk,
            n_elems=n_elems, eps=float(eps))
        # TODO(synk): when B < number of TensorCores (v7x), pass 1 could also be
        # split along HW across cores; grid=(B,) keeps it simple/correct.
        out_p, means, stds = pl.pallas_call(
            kernel,
            out_shape=(
                jax.ShapeDtypeStruct((B, C, HWp_f), x.dtype),
                jax.ShapeDtypeStruct((B, 1, 1), jnp.float32),
                jax.ShapeDtypeStruct((B, 1, 1), jnp.float32),
            ),
            grid_spec=pltpu.PrefetchScalarGridSpec(
                num_scalar_prefetch=0,
                grid=(B,),
                in_specs=[
                    pl.BlockSpec((1, C, HWp_f), lambda b: (b, 0, 0)),
                    pl.BlockSpec((1, C, 1), lambda b: (0, 0, 0)),
                    pl.BlockSpec((1, C, 1), lambda b: (0, 0, 0)),
                ],
                out_specs=[
                    pl.BlockSpec((1, C, HWp_f), lambda b: (b, 0, 0)),
                    pl.BlockSpec((1, 1, 1), lambda b: (b, 0, 0)),
                    pl.BlockSpec((1, 1, 1), lambda b: (b, 0, 0)),
                ],
            ),
            compiler_params=pltpu.CompilerParams(
                dimension_semantics=("parallel",),
                vmem_limit_bytes=int(budget)),
        )(x_flat, w3, b3)
        out = out_p[:, :, :HW].reshape(B, C, H, W)
        mean = means.reshape(B)
        std = stds.reshape(B)
    else:
        # ------------- two-pass fallback for very large samples -------------
        target_bytes = max(512 * 1024, min(8 * 1024 * 1024, budget // 6))
        tile = _pick_tile_lanes(HW, C, itemsize, target_bytes)
        HWp = _round_up(HW, tile)
        n_tiles = HWp // tile
        x_flat = x.reshape(B, C, HW)
        if HWp != HW:
            x_flat = jnp.pad(x_flat, ((0, 0), (0, 0), (0, HWp - HW)))

        # pass 1: per-sample vector partial sums / sum-of-squares
        sums_v, ssqs_v = pl.pallas_call(
            _stats_kernel,
            out_shape=(
                jax.ShapeDtypeStruct((B, C, 128), jnp.float32),
                jax.ShapeDtypeStruct((B, C, 128), jnp.float32),
            ),
            grid_spec=pltpu.PrefetchScalarGridSpec(
                num_scalar_prefetch=0,
                grid=(B, n_tiles),
                in_specs=[pl.BlockSpec((1, C, tile), lambda b, t: (b, 0, t))],
                out_specs=[
                    pl.BlockSpec((1, C, 128), lambda b, t: (b, 0, 0)),
                    pl.BlockSpec((1, C, 128), lambda b, t: (b, 0, 0)),
                ],
            ),
            compiler_params=pltpu.CompilerParams(
                dimension_semantics=("parallel", "arbitrary"),
                vmem_limit_bytes=int(budget)),
        )(x_flat)

        sums = jnp.sum(sums_v, axis=(1, 2))
        ssqs = jnp.sum(ssqs_v, axis=(1, 2))
        mean = sums / n_elems
        var = jnp.maximum(ssqs / n_elems - mean * mean, 0.0)
        std = jnp.sqrt(var + eps)
        inv_std = 1.0 / std

        scale = w3.reshape(1, C) * inv_std[:, None]       # (B, C)
        shift = b3.reshape(1, C) - mean[:, None] * scale  # (B, C)
        scale3 = scale.reshape(B, C, 1)
        shift3 = shift.reshape(B, C, 1)

        # pass 2: out = x * scale + shift
        out_p = pl.pallas_call(
            _apply_kernel,
            out_shape=jax.ShapeDtypeStruct((B, C, HWp), x.dtype),
            grid_spec=pltpu.PrefetchScalarGridSpec(
                num_scalar_prefetch=0,
                grid=(B, n_tiles),
                in_specs=[
                    pl.BlockSpec((1, C, tile), lambda b, t: (b, 0, t)),
                    pl.BlockSpec((1, C, 1), lambda b, t: (b, 0, 0)),
                    pl.BlockSpec((1, C, 1), lambda b, t: (b, 0, 0)),
                ],
                out_specs=pl.BlockSpec((1, C, tile), lambda b, t: (b, 0, t)),
            ),
            compiler_params=pltpu.CompilerParams(
                dimension_semantics=("parallel", "parallel"),
                vmem_limit_bytes=int(budget)),
        )(x_flat, scale3, shift3)
        out = out_p[:, :, :HW].reshape(B, C, H, W)

    # meta1/meta2 are 1x1 convs of the scalar std/mean -> per-channel affine (O(B*C)).
    rescale = (std[:, None] * m1_w.reshape(1, C).astype(jnp.float32)
               + m1_b.reshape(1, C).astype(jnp.float32)).reshape(B, C, 1, 1)
    rebias = (mean[:, None] * m2_w.reshape(1, C).astype(jnp.float32)
              + m2_b.reshape(1, C).astype(jnp.float32)).reshape(B, C, 1, 1)
    return out, rescale, rebias


# --------------------------------------------------------------------------
# Pure-JAX reference (mirrors the PyTorch forward)
# --------------------------------------------------------------------------
def _reference(x, weight, bias, m1_w, m1_b, m2_w, m2_b, eps=1e-5):
    mean = jnp.mean(x, axis=(1, 2, 3), keepdims=True)
    std = jnp.sqrt(jnp.mean((x - mean) ** 2, axis=(1, 2, 3), keepdims=True) + eps)
    norm = (x - mean) / std
    out = norm * weight.reshape(1, -1, 1, 1) + bias.reshape(1, -1, 1, 1)
    rescale = std * m1_w.reshape(1, -1, 1, 1) + m1_b.reshape(1, -1, 1, 1)
    rebias = mean * m2_w.reshape(1, -1, 1, 1) + m2_b.reshape(1, -1, 1, 1)
    return out, rescale, rebias


if __name__ == "__main__":
    B, C, H, W = 2, 4, 16, 16
    key = jax.random.PRNGKey(0)
    kx, k1, k2 = jax.random.split(key, 3)

    x = jax.random.normal(kx, (B, C, H, W), dtype=jnp.float32)

    # Parameter init mirroring RLN.__init__:
    #   weight = ones(1,C,1,1), bias = zeros(1,C,1,1)
    #   meta1: Conv2d(1, C, 1) weight ~ trunc_normal(std=0.02), bias = 1
    #   meta2: Conv2d(1, C, 1) weight ~ trunc_normal(std=0.02), bias = 0
    weight = jnp.ones((C,), dtype=jnp.float32)
    bias = jnp.zeros((C,), dtype=jnp.float32)
    m1_w = (jax.random.truncated_normal(k1, -2.0, 2.0, (C,)) * 0.02).astype(jnp.float32)
    m1_b = jnp.ones((C,), dtype=jnp.float32)
    m2_w = (jax.random.truncated_normal(k2, -2.0, 2.0, (C,)) * 0.02).astype(jnp.float32)
    m2_b = jnp.zeros((C,), dtype=jnp.float32)

    out_r, rescale_r, rebias_r = _reference(x, weight, bias, m1_w, m1_b, m2_w, m2_b)

    # TODO(synk): detach_grad only affects backward (gradient stopping); forward is identical.

    # Fused single-sweep path (the default for samples that fit in VMEM).
    out, rescale, rebias = rln_forward(x, weight, bias, m1_w, m1_b, m2_w, m2_b)
    jax.block_until_ready((out, rescale, rebias))
    assert jnp.allclose(out, out_r, atol=1e-5, rtol=1e-5)
    assert jnp.allclose(rescale, rescale_r, atol=1e-6, rtol=1e-5)
    assert jnp.allclose(rebias, rebias_r, atol=1e-6, rtol=1e-5)

    # Two-pass fallback path (used when a sample exceeds the VMEM budget).
    out2, rescale2, rebias2 = rln_forward(x, weight, bias, m1_w, m1_b, m2_w, m2_b,
                                          force_two_pass=True)
    jax.block_until_ready((out2, rescale2, rebias2))
    assert jnp.allclose(out2, out_r, atol=1e-5, rtol=1e-5)
    assert jnp.allclose(rescale2, rescale_r, atol=1e-6, rtol=1e-5)
    assert jnp.allclose(rebias2, rebias_r, atol=1e-6, rtol=1e-5)

    print("KERNEL_OK")
</pallas_src>

<mosaic_0001>
module attributes {stable_mosaic.version = 11 : i64} {
  func.func @_fused_rln_kernel(%arg0: i32, %arg1: memref<1x4x256xf32, #tpu.memory_space<vmem>>, %arg2: memref<1x4x1xf32, #tpu.memory_space<vmem>>, %arg3: memref<1x4x1xf32, #tpu.memory_space<vmem>>, %arg4: memref<1x4x256xf32, #tpu.memory_space<vmem>>, %arg5: memref<1x1x1xf32, #tpu.memory_space<vmem>>, %arg6: memref<1x1x1xf32, #tpu.memory_space<vmem>>) attributes {dimension_semantics = [#tpu.dimension_semantics<parallel>], iteration_bounds = array<i64: 2>, scalar_prefetch = 0 : i64, scratch_operands = 0 : i64, tpu.core_type = #tpu.core_type<tc>, window_params = [{transform_indices = @transform_0, window_bounds = array<i64: 1, 4, 256>}, {pipeline_mode = #tpu.pipeline_mode<synchronous>, transform_indices = @transform_1, window_bounds = array<i64: 1, 4, 1>}, {pipeline_mode = #tpu.pipeline_mode<synchronous>, transform_indices = @transform_2, window_bounds = array<i64: 1, 4, 1>}, {transform_indices = @transform_3, window_bounds = array<i64: 1, 4, 256>}, {transform_indices = @transform_4, window_bounds = array<i64: 1, 1, 1>}, {transform_indices = @transform_5, window_bounds = array<i64: 1, 1, 1>}]} {
    %cst = arith.constant 0.000000e+00 : f32
    %0 = vector.broadcast %cst : f32 to vector<4x128xf32>
    %c0_i32 = arith.constant 0 : i32
    %c256_i32 = arith.constant 256 : i32
    %1 = arith.muli %c0_i32, %c256_i32 : i32
    %2 = tpu.assume_multiple %1, 128 : i32
    %c0 = arith.constant 0 : index
    %c0_0 = arith.constant 0 : index
    %3 = arith.index_cast %2 : i32 to index
    %4 = vector.load %arg1[%c0, %c0_0, %3] : memref<1x4x256xf32, #tpu.memory_space<vmem>>, vector<1x4x256xf32>
    %5 = vector.shape_cast %4 : vector<1x4x256xf32> to vector<4x256xf32>
    %6 = vector.extract_strided_slice %5 {offsets = [0, 0], sizes = [4, 128], strides = [1, 1]} : vector<4x256xf32> to vector<4x128xf32>
    %7 = arith.addf %0, %6 : vector<4x128xf32>
    %8 = arith.mulf %6, %6 : vector<4x128xf32>
    %9 = arith.addf %0, %8 : vector<4x128xf32>
    %10 = vector.extract_strided_slice %5 {offsets = [0, 128], sizes = [4, 128], strides = [1, 1]} : vector<4x256xf32> to vector<4x128xf32>
    %11 = arith.addf %7, %10 : vector<4x128xf32>
    %12 = arith.mulf %10, %10 : vector<4x128xf32>
    %13 = arith.addf %9, %12 : vector<4x128xf32>
    %c1_i32 = arith.constant 1 : i32
    %14 = vector.shape_cast %11 : vector<4x128xf32> to vector<1x4x128xf32>
    %cst_1 = arith.constant dense<0.000000e+00> : vector<1xf32>
    %15 = vector.multi_reduction <add>, %14, %cst_1 [1, 2] : vector<1x4x128xf32> to vector<1xf32>
    %16 = vector.shape_cast %15 : vector<1xf32> to vector<1x1x1xf32>
    %17 = vector.extract %16[0, 0, 0] : f32 from vector<1x1x1xf32>
    %18 = vector.shape_cast %13 : vector<4x128xf32> to vector<1x4x128xf32>
    %cst_2 = arith.constant dense<0.000000e+00> : vector<1xf32>
    %19 = vector.multi_reduction <add>, %18, %cst_2 [1, 2] : vector<1x4x128xf32> to vector<1xf32>
    %20 = vector.shape_cast %19 : vector<1xf32> to vector<1x1x1xf32>
    %21 = vector.extract %20[0, 0, 0] : f32 from vector<1x1x1xf32>
    %cst_3 = arith.constant 1.024000e+03 : f32
    %22 = arith.divf %17, %cst_3 : f32
    %cst_4 = arith.constant 1.024000e+03 : f32
    %23 = arith.divf %21, %cst_4 : f32
    %24 = arith.mulf %22, %22 : f32
    %25 = arith.subf %23, %24 : f32
    %cst_5 = arith.constant 0.000000e+00 : f32
    %26 = arith.maximumf %25, %cst_5 : f32
    %cst_6 = arith.constant 9.99999974E-6 : f32
    %27 = arith.addf %26, %cst_6 : f32
    %28 = math.sqrt %27 : f32
    %cst_7 = arith.constant 1.000000e+00 : f32
    %29 = arith.divf %cst_7, %28 : f32
    %c0_8 = arith.constant 0 : index
    %c0_9 = arith.constant 0 : index
    %c0_10 = arith.constant 0 : index
    %30 = vector.load %arg2[%c0_8, %c0_9, %c0_10] : memref<1x4x1xf32, #tpu.memory_space<vmem>>, vector<1x4x1xf32>
    %31 = vector.shape_cast %30 : vector<1x4x1xf32> to vector<4x1xf32>
    %32 = vector.broadcast %29 : f32 to vector<4x1xf32>
    %33 = arith.mulf %31, %32 : vector<4x1xf32>
    %c0_11 = arith.constant 0 : index
    %c0_12 = arith.constant 0 : index
    %c0_13 = arith.constant 0 : index
    %34 = vector.load %arg3[%c0_11, %c0_12, %c0_13] : memref<1x4x1xf32, #tpu.memory_space<vmem>>, vector<1x4x1xf32>
    %35 = vector.shape_cast %34 : vector<1x4x1xf32> to vector<4x1xf32>
    %36 = vector.broadcast %22 : f32 to vector<4x1xf32>
    %37 = arith.mulf %36, %33 : vector<4x1xf32>
    %38 = arith.subf %35, %37 : vector<4x1xf32>
    %c0_i32_14 = arith.constant 0 : i32
    %c256_i32_15 = arith.constant 256 : i32
    %39 = arith.muli %c0_i32_14, %c256_i32_15 : i32
    %40 = tpu.assume_multiple %39, 128 : i32
    %c0_16 = arith.constant 0 : index
    %c0_17 = arith.constant 0 : index
    %41 = arith.index_cast %40 : i32 to index
    %42 = vector.load %arg1[%c0_16, %c0_17, %41] : memref<1x4x256xf32, #tpu.memory_space<vmem>>, vector<1x4x256xf32>
    %43 = vector.shape_cast %42 : vector<1x4x256xf32> to vector<4x256xf32>
    %44 = vector.broadcast %33 : vector<4x1xf32> to vector<4x256xf32>
    %45 = arith.mulf %43, %44 : vector<4x256xf32>
    %46 = vector.broadcast %38 : vector<4x1xf32> to vector<4x256xf32>
    %47 = arith.addf %45, %46 : vector<4x256xf32>
    %c0_18 = arith.constant 0 : index
    %c0_19 = arith.constant 0 : index
    %48 = arith.index_cast %40 : i32 to index
    %49 = vector.load %arg4[%c0_18, %c0_19, %48] : memref<1x4x256xf32, #tpu.memory_space<vmem>>, vector<1x4x256xf32>
    %50 = vector.shape_cast %49 : vector<1x4x256xf32> to vector<4x256xf32>
    %51 = vector.shape_cast %47 : vector<4x256xf32> to vector<1x4x256xf32>
    tpu.vector_store %arg4[%c0_18, %c0_19, %48], %51 {strides = array<i32>} : memref<1x4x256xf32, #tpu.memory_space<vmem>>, vector<1x4x256xf32>,
    %c1_i32_20 = arith.constant 1 : i32
    %52 = vector.broadcast %22 : f32 to vector<1x1x1xf32>
    %c0_21 = arith.constant 0 : index
    %c0_22 = arith.constant 0 : index
    %c0_23 = arith.constant 0 : index
    %53 = vector.load %arg5[%c0_21, %c0_22, %c0_23] : memref<1x1x1xf32, #tpu.memory_space<vmem>>, vector<1x1x1xf32>
    tpu.vector_store %arg5[%c0_21, %c0_22, %c0_23], %52 {strides = array<i32>} : memref<1x1x1xf32, #tpu.memory_space<vmem>>, vector<1x1x1xf32>,
    %54 = vector.broadcast %28 : f32 to vector<1x1x1xf32>
    %c0_24 = arith.constant 0 : index
    %c0_25 = arith.constant 0 : index
    %c0_26 = arith.constant 0 : index
    %55 = vector.load %arg6[%c0_24, %c0_25, %c0_26] : memref<1x1x1xf32, #tpu.memory_space<vmem>>, vector<1x1x1xf32>
    tpu.vector_store %arg6[%c0_24, %c0_25, %c0_26], %54 {strides = array<i32>} : memref<1x1x1xf32, #tpu.memory_space<vmem>>, vector<1x1x1xf32>,
    return
  }
  func.func @transform_0(%arg0: i32) -> (i32, i32, i32) {
    %c0_i32 = arith.constant 0 : i32
    %c0_i32_0 = arith.constant 0 : i32
    %c0_i32_1 = arith.constant 0 : i32
    return %arg0, %c0_i32, %c0_i32_0 : i32, i32, i32
  }
  func.func @transform_1(%arg0: i32) -> (i32, i32, i32) {
    %c0_i32 = arith.constant 0 : i32
    %c0_i32_0 = arith.constant 0 : i32
    %c0_i32_1 = arith.constant 0 : i32
    %c0_i32_2 = arith.constant 0 : i32
    return %c0_i32, %c0_i32_0, %c0_i32_1 : i32, i32, i32
  }
  func.func @transform_2(%arg0: i32) -> (i32, i32, i32) {
    %c0_i32 = arith.constant 0 : i32
    %c0_i32_0 = arith.constant 0 : i32
    %c0_i32_1 = arith.constant 0 : i32
    %c0_i32_2 = arith.constant 0 : i32
    return %c0_i32, %c0_i32_0, %c0_i32_1 : i32, i32, i32
  }
  func.func @transform_3(%arg0: i32) -> (i32, i32, i32) {
    %c0_i32 = arith.constant 0 : i32
    %c0_i32_0 = arith.constant 0 : i32
    %c0_i32_1 = arith.constant 0 : i32
    return %arg0, %c0_i32, %c0_i32_0 : i32, i32, i32
  }
  func.func @transform_4(%arg0: i32) -> (i32, i32, i32) {
    %c0_i32 = arith.constant 0 : i32
    %c0_i32_0 = arith.constant 0 : i32
    %c0_i32_1 = arith.constant 0 : i32
    return %arg0, %c0_i32, %c0_i32_0 : i32, i32, i32
  }
  func.func @transform_5(%arg0: i32) -> (i32, i32, i32) {
    %c0_i32 = arith.constant 0 : i32
    %c0_i32_0 = arith.constant 0 : i32
    %c0_i32_1 = arith.constant 0 : i32
    return %arg0, %c0_i32, %c0_i32_0 : i32, i32, i32
  }
}

</mosaic_0001>

<bundles_post_ra>
// kernel: tpu_custom_call.1
= control target key start
LH: loop header
LB: loop body
LE: loop exit
PB: predicated region body
PF: predicated region fallthrough
CT: control target
= control target key end

     0   :  { %11 = vsyncpa [#allocation3], 0  ;;  %s891_s0 = inlined_call_operand.hbm [shape: f32[2,4,256], index: 0, kind: input, shape index: {}]   ;;  %s892_s1 = inlined_call_operand.vmem [shape: f32[1,4,1], index: 1, kind: input, shape index: {}]   ;;  %s893_s2 = inlined_call_operand.vmem [shape: f32[1,4,1], index: 2, kind: input, shape index: {}]   ;;  %s894_s3 = inlined_call_operand.hbm [shape: f32[2,4,256], index: 3, kind: output, shape index: {0}]   ;;  %s895_s4 = inlined_call_operand.vmem [shape: f32[2,1,1], index: 4, kind: output, shape index: {1}]   ;;  %s896_s5 = inlined_call_operand.vmem [shape: f32[2,1,1], index: 5, kind: output, shape index: {2}]  }
   0x1   :  { %13 = vsyncpa [#allocation3 + $0x1], 0 }
   0x2   :  { %14 = vsyncpa [#allocation4], 0 }
   0x3   :  { %16 = vsyncpa [#allocation4 + $0x1], 0  ;;  %s728_s18 = smov 0   ;;  %s730_s19 = smov 0  }
   0x4   :  { %s732_s20 = smov 0   ;;  %s734_s21 = smov 0  }
   0x5 LB: > { %s749_s22 = sadd.s32 4294967295, %s692_s21   ;;  %s512_s23 = sadd.s32 4294967294, %s692_s21   ;;  %s692_s21 = sphi %s734_s21, %s906_s21   ;;  %s688_s20 = sphi %s732_s20, %s905_s20   ;;  %s684_s19 = sphi %s730_s19, %s904_s19   ;;  %s680_s18 = sphi %s728_s18, %s903_s18  }
   0x6   : > { %s753_s24 = sadd.s32 1, %s692_s21   ;;  %s29_s25 = sadd.s32 1, %s688_s20 }
   0x7   : > { %s26_s26 = ssub.s32 %s692_s21, %s753_s24  ;;  %p36_p0 = scmp.ne.s32.totalorder %s688_s20, %s684_s19 }
   0x8   : > { %p27_p1 = scmp.eq.s32.totalorder %s26_s26, 0  ;;  %p37_p2 = scmp.eq.s32.totalorder %s692_s21, 0 }
   0x9   : > { %p42_p3 = scmp.ne.s32.totalorder %s684_s19, %s680_s18  ;;  %p43_p4 = scmp.eq.s32.totalorder %s749_s22, 0 }
   0xa   : > { %s765_s27 = scalar_select %p27_p1, %s688_s20, %s29_s25  }
   0xb   : > { %p767_p5 = por %p37_p2, %p36_p0  ;;  %p771_p6 = por %p43_p4, %p42_p3 }
   0xc   : > { %p108_p7 = scmp.eq.s32.totalorder %s749_s22, 1  ;;  %p114_p8 = scmp.eq.s32.totalorder %s512_s23, 1 }
   0xd   : > { %p550_p10 = scmp.lt.s32.totalorder %s692_s21, 2  ;;  %s192_s7 = sand.u32 1, %s688_s20  }
   0xe   : > { %p778_p11 = por %p108_p7, %p36_p0  ;;  %p782_p12 = por %p114_p8, %p42_p3 }
   0xf   : > { %s526_s8 = sshll.u32 %s692_s21, 3  ;;  %s515_s9 = sshll.u32 %s192_s7, 3 }
  0x10   : > { %s201_s12 = scalar_lea.hbm %s891_s0, %s526_s8  ;;  %s196_s14 = scalar_lea.vmem [#allocation2], %s515_s9 }
  0x11   : > { %s203_s13 = sshll.u32 %s201_s12, 4  ;;  %s205_s15 = sshll.u32 %s196_s14, 4  ;;  %s204_s13 = int_to_ptr.hbm [resolvable:$true] %s203_s13  ;;  %s206_s15 = int_to_ptr.vmem [resolvable:$true] %s205_s15 }
  0x12   : > { %p793_p13 = pnand %p550_p10, %p767_p5  ;;  %p518_p0 = scmp.ge.s32.totalorder %s692_s21, 1 }
  0x13   : > { %p210_p1 = scmp.lt.s32.totalorder %s692_s21, 3  ;;  %s193_s17 = scalar_lea.sflag [#allocation3], %s192_s7 }
  0x14   : > { %s596_s23 = sshra.s32 %s204_s13, 4  ;;  %p600_p3 = pneg %p793_p13  ;;  %s597_s23 = int_to_ptr.hbm [resolvable:$true] %s596_s23 }
  0x15   : > { %s598_s25 = scalar_lea.hbm %s597_s23, 8  ;;  %s603_s28 = scalar_lea.hbm %s891_s0, 16 }
  0x16   : > { %p599_p2 = scmp.ne.s32.totalorder %s597_s23, %s598_s25  ;;  %p604_p5 = scmp.lt.s32.totalorder %s597_s23, %s891_s0 }
  0x17   : > { %p605_p8 = scmp.lt.s32.totalorder %s603_s28, %s598_s25 }
  0x18   : > { %p601_p4 = pnand %p600_p3, %p599_p2 }
  0x19   : > { %p606_p10 = por %p605_p8, %p604_p5 }
  0x1a   : > { %p602_p7 = pneg %p601_p4 }
  0x1c   : > { %p607_p9 = pnand %p606_p10, %p602_p7 }
  0x1e   : > { %610 = shalt.err (!%p607_p9)
}
  0x1f   : > { %545 = dma.hbm_to_vmem [thread:$0]  (!%p793_p13), %s204_s13, 128, %s206_s15, %s193_s17  }
  0x20   : > { %p211_p2 = pnand %p518_p0, %p210_p1 }
  0x21   : > { %s814_s7 = sand.u32 (!%p211_p2), 1, %s684_s19  }
  0x22   : > { %214 = sbr.rel (%p211_p2) target bundleno = 515 (0x203), region = 32  ;;  %s519_s11 = sshll.u32 (!%p211_p2), %s814_s7, 3 }
  0x23   : > { %s217_s12 = scalar_lea.sflag (!%p211_p2), [#allocation3], %s814_s7  ;;  %s220_s14 = scalar_lea.vmem (!%p211_p2), [#allocation2], %s519_s11 }
  0x27   : > { %671 = dma.done.wait (%p771_p6), %s217_s12, 128  }
  0x28   : > { %673 = vsyncadd (%p771_p6), %s217_s12, 4294967168  ;;  %v824_v0 = vld [vmem:[%s220_s14] sm:$0xff]  ;;  %vm270_vm0 = vcmask 1043456   ;;  %v694_v8 = vmov 1024.0   ;;  %p254_p6 = scmp.lt.s32.totalorder %s749_s22, 1  ;;  %vm371_vm2 = vcmask 0  }
  0x29   : > { %v265_v1 = vrot.slane %v824_v0, 4  ;;  %v262_v3 = vmul.f32 %v824_v0, %v824_v0  ;;  %590 = vrcp.f32 %v694_v8  ;;  %s695_s10 = smov 0.0   ;;  %v696_v52 = vmov 0   ;;  %v343_v53 = vld [vmem:[%s892_s1] sm:$0xf] }
  0x2a   : > { %s832_s29 = scalar_select %p254_p6, %s749_s22, 1  ;;  %588 = vset.pattern.permute.xlu1 %v696_v52  ;;  %589 = vset.pattern.permute.xlu0 %v696_v52  ;;  %v346_v57 = vld [vmem:[%s893_s2] sm:$0xf]  ;;  %v697_v59 = vmov 839922192  }
  0x2b   : > { %v267_v2 = vadd.f32 %v265_v1, %v824_v0  ;;  %v268_v4 = vmul.f32 %v265_v1, %v265_v1  ;;  %v355_v60 = vunpack.c.l.s4 %v697_v59 }
  0x2c   : > { %s256_s26 = scalar_lea.vmem %s895_s4, %s832_s29 }
  0x2d   : > { %v271_v5 = vsel %vm270_vm0, %v267_v2, 0.0  ;;  %v269_v6 = vadd.f32 %v268_v4, %v262_v3  ;;  %v356_v62 = vunpack.c.0.s8 %v355_v60 }
  0x2e   : > { %272 = vadd.xlane.f32.xlu0 %v271_v5 }
  0x2f   : > { %v281_v7 = vsel %vm270_vm0, %v269_v6, 0.0  ;;  %v591_v9 = vpop.eup %590 }
  0x30   : > { %v292_v13 = vmul.f32 1024.0, %v591_v9  ;;  %vm296_vm1 = vweird.f32 %v591_v9 }
  0x32   : > { %v293_v16 = vsub.f32 1.0, %v292_v13 }
  0x34   : > { %v294_v22 = vmul.f32 %v591_v9, %v293_v16 }
  0x36   : > { %282 = vadd.xlane.f32.xlu0 %v281_v7  ;;  %v295_v25 = vadd.f32 %v591_v9, %v294_v22 }
  0x38   : > { %v297_v28 = vsel %vm296_vm1, %v591_v9, %v295_v25 }
  0xa1   : > { %v273_v10 = vpop.xlane.xlu0 %272 }
  0xa2   : > { %v274_v11 = vrot.slane %v273_v10, 4 }
  0xa4   : > { %v275_v12 = vadd.f32 %v274_v11, %v273_v10 }
  0xa6   : > { %v276_v14 = vrot.slane %v275_v12, 2 }
  0xa8   : > { %v277_v15 = vadd.f32 %v276_v14, %v275_v12 }
  0xa9   : > { %v283_v17 = vpop.xlane.xlu0 %282 }
  0xaa   : > { %v284_v18 = vrot.slane %v283_v17, 4  ;;  %v278_v19 = vrot.slane %v277_v15, 1 }
  0xac   : > { %v285_v20 = vadd.f32 %v284_v18, %v283_v17  ;;  %v279_v21 = vadd.f32 %v278_v19, %v277_v15 }
  0xae   : > { %v286_v23 = vrot.slane %v285_v20, 2  ;;  %528 = vpush %v279_v21 }
  0xb0   : > { %v287_v24 = vadd.f32 %v286_v23, %v285_v20 }
  0xb2   : > { %v288_v26 = vrot.slane %v287_v24, 1 }
  0xb4   : > { %v289_v27 = vadd.f32 %v288_v26, %v287_v24 }
  0xb6   : > { %530 = vpush %v289_v27 }
  0xb7   : > { %532 = vpush %v297_v28 }
  0xdf   : > { %s529_s13 = spop %528 }
  0xe7   : > { %s531_s15 = spop %530 }
  0xe8   : > { %s533_s16 = spop %532 }
  0xe9   : > { %s834_s17 = smul.f32 %s533_s16, %s529_s13 }
  0xea   : > { %s308_s8 = smul.f32 %s533_s16, %s531_s15  ;;  %s259_s16 = scalar_lea.vmem %s896_s5, %s832_s29 }
  0xeb   : > { %s309_s28 = smul.f32 %s834_s17, %s834_s17  ;;  %v347_v29 = vstv %s834_s17 }
  0xec   : > { %372 = vst.msk [vmem:[%s256_s26] sm:$0x1] %vm371_vm2, %v347_v29 }
  0xed   : > { %s310_s9 = ssub.f32 %s308_s8, %s309_s28  ;;  %s527_s28 = sshll.u32 %s749_s22, 3 }
  0xef   : > { %s311_s12 = smax.f32 %s695_s10, %s310_s9 }
  0xf0   : > { %s312_s14 = sadd.f32 1e-05, %s311_s12  ;;  %s393_s12 = scalar_lea.hbm %s894_s3, %s527_s28 }
  0xf1   : > { %s397_s15 = sshll.u32 %s393_s12, 4  ;;  %s398_s15 = int_to_ptr.hbm [resolvable:$true] %s397_s15 }
  0xf2   : > { %v313_v30 = vstv %s312_s14  ;;  %s243_s14 = scalar_lea.vmem [#allocation5], %s519_s11  ;;  %s640_s22 = sshra.s32 %s398_s15, 4  ;;  %s641_s22 = int_to_ptr.hbm [resolvable:$true] %s640_s22 }
  0xf3   : > { %592 = vrsqrt.f32 %v313_v30  ;;  %vm321_vm3 = vcmp.eq.f32.partialorder %v313_v30, inf  ;;  %v324_v38 = vand.u32 2147483648, %v313_v30  ;;  %vm323_vm4 = vcmp.eq.f32.partialorder %v313_v30, 0.0  ;;  %s395_s13 = sshll.u32 %s243_s14, 4  ;;  %s646_s11 = scalar_lea.hbm %s894_s3, 16  ;;  %s396_s13 = int_to_ptr.vmem [resolvable:$true] %s395_s13 }
  0xf4   : > { %p647_p1 = scmp.lt.s32.totalorder %s641_s22, %s894_s3 }
  0xf9   : > { %v593_v31 = vpop.eup %592 }
  0xfa   : > { %v315_v32 = vmul.f32 %v593_v31, %v313_v30 }
  0xfc   : > { %v316_v33 = vmul.f32 %v593_v31, %v315_v32 }
  0xfe   : > { %v317_v34 = vmul.f32 0.5, %v316_v33 }
 0x100   : > { %v318_v35 = vsub.f32 1.5, %v317_v34 }
 0x102   : > { %v319_v36 = vmul.f32 %v593_v31, %v318_v35 }
 0x104   : > { %v320_v37 = vmul.f32 %v319_v36, %v313_v30 }
 0x106   : > { %v322_v39 = vsel %vm321_vm3, %v313_v30, %v320_v37 }
 0x107   : > { %v325_v40 = vsel %vm323_vm4, %v324_v38, %v322_v39 }
 0x108   : > { %534 = vpush %v325_v40 }
 0x139   : > { %s535_s17 = spop %534 }
 0x13a   : > { %v327_v41 = vstv %s535_s17  ;;  %s642_s17 = scalar_lea.hbm %s641_s22, 8 }
 0x13b   : > { %594 = vrcp.f32 %v327_v41  ;;  %374 = vst.msk [vmem:[%s259_s16] sm:$0x1] %vm371_vm2, %v327_v41  ;;  %v339_v45 = vand.u32 2147483648, %v327_v41  ;;  %v337_v47 = vand.u32 2147483647, %v327_v41  ;;  %vm333_vm6 = vweird.f32 %v327_v41  ;;  %s376_s16 = scalar_lea.sflag [#allocation4], %s814_s7  ;;  %p643_p9 = scmp.ne.s32.totalorder %s641_s22, %s642_s17 }
 0x13c   : > { %p648_p3 = scmp.lt.s32.totalorder %s646_s11, %s642_s17 }
 0x13d   : > { %v340_v49 = vor.u32 1.1754944e-38, %v339_v45  ;;  %vm338_vm8 = vcmp.eq.f32.partialorder %v337_v47, 8.507059e+37  ;;  %p644_p13 = pnand %p643_p9, %p778_p11 }
 0x13e   : > { %p649_p4 = por %p648_p3, %p647_p1 }
 0x13f   : > { %p645_p0 = pneg %p644_p13 }
 0x141   : > { %v595_v42 = vpop.eup %594  ;;  %p650_p7 = pnand %p649_p4, %p645_p0 }
 0x142   : > { %v329_v43 = vmul.f32 %v595_v42, %v327_v41  ;;  %vm334_vm5 = vweird.f32 %v595_v42 }
 0x143   : > { %vm335_vm7 = vmor %vm333_vm6, %vm334_vm5 }
 0x144   : > { %v330_v44 = vsub.f32 1.0, %v329_v43 }
 0x146   : > { %v331_v46 = vmul.f32 %v595_v42, %v330_v44 }
 0x148   : > { %v332_v48 = vadd.f32 %v595_v42, %v331_v46 }
 0x14a   : > { %v336_v50 = vsel %vm335_vm7, %v595_v42, %v332_v48 }
 0x14b   : > { %v341_v51 = vsel %vm338_vm8, %v340_v49, %v336_v50 }
 0x14c   : > { %536 = vpush %v341_v51 }
 0x17d   : > { %s537_s25 = spop %536 }
 0x17e   : > { %v344_v54 = vstv %s537_s25 }
 0x17f   : > { %v345_v55 = vmul.f32 %v344_v54, %v343_v53 }
 0x181   : > { %352 = vperm.xlu1 %588, %v345_v55   ;;  %v348_v56 = vmul.f32 %v347_v29, %v345_v55 }
 0x183   : > { %v349_v58 = vsub.f32 %v346_v57, %v348_v56 }
 0x189   : > { %362 = vperm.xlu1 %588, %v349_v58  }
 0x1f3   : > { %v353_v61 = vpop.permute.xlu1 %352 }
 0x1f4   : > { %v357_v63 = vperm.slane %v353_v61, %v356_v62 }
 0x1f6   : > { %v359_v2 = vmul.f32 %v357_v63, %v824_v0 }
 0x1fb   : > { %v363_v1 = vpop.permute.xlu1 %362 }
 0x1fc   : > { %v367_v3 = vperm.slane %v363_v1, %v356_v62 }
 0x1fe   : > { %v369_v4 = vadd.f32 %v367_v3, %v359_v2 }
 0x200   : > { %370 = vst [vmem:[%s243_s14] sm:$0xff] %v369_v4 }
 0x201   : > { %653 = shalt.err (!%p650_p7)
}
 0x202   : > { %540 = dma.vmem_to_hbm [thread:$0]  (%p778_p11), %s396_s13, 128, %s398_s15, %s376_s16  }
 0x203 PF: > { %s415_s7 = sand.u32 1, %s680_s18   ;;  %p902_p5 = scmp.ge.s32.totalorder %s692_s21, 2 }
 0x204   : > { %s416_s8 = scalar_lea.sflag [#allocation4], %s415_s7 }
 0x205   : > { %p547_p8 = pnand %p902_p5, %p782_p12 }
 0x207   : > { %p548_p10 = pneg %p547_p8 }
 0x209   : > { %675 = dma.done.wait (%p548_p10), %s416_s8, 128  }
 0x20a   : > { %677 = vsyncadd (%p548_p10), %s416_s8, 4294967168  ;;  %p19_p2 = scmp.ge.s32.totalorder %s753_s24, 4   ;;  %s903_s18 = smov %s684_s19 }
 0x20b   : > { %s904_s19 = smov %s688_s20  ;;  %s905_s20 = smov %s765_s27 }
 0x20c   : > { %s906_s21 = smov %s753_s24  ;;  %21 = sbr.rel (!%p19_p2) target bundleno = 5 (0x5), region = 101 }
 0x211   :  { %434 = vsyncpa [#allocation3], 1 }
 0x212   :  { %436 = vsyncpa [#allocation3 + $0x1], 1 }
 0x213   :  { %437 = vsyncpa [#allocation4], 1 }
 0x214   :  { %439 = vsyncpa [#allocation4 + $0x1], 1 }

</bundles_post_ra>
